<compile_context>
chip_gen: v5e
topology: v5e:2x2
jax: 0.10.0
libtpu: 0.0.40
codegen_flags: <defaults>
</compile_context>

<pallas_src>
from functools import partial

import jax
import jax.numpy as jnp
import numpy as np
from jax.experimental import pallas as pl
from jax.experimental.pallas import tpu as pltpu

LANE = 128   # TPU lane width
SUB_BF16 = 16  # bf16 sublane-packing height (row-alignment for packed weights)


def _line_gcn_fused_kernel(x_ref, adj_ref, y_ref, inc_ref, w_ref, b_ref, out_ref,
                           *, nclass, nhid, nfeat, efeat, w_offs):
    """Fused Line_GCN forward.

    All operands are single whole-array VMEM blocks (toy graph sizes);
    intermediates h_v / h_e live entirely in vregs/VMEM, never HBM.
    Weights arrive packed in one bf16 buffer, biases in one f32 buffer;
    static Ref slices below are free.
    """
    o_w1v, o_w1e, o_w2v, o_w2e = w_offs
    bf16 = jnp.bfloat16
    f32 = jnp.float32

    # --- unpack parameters (static slices of the packed refs) --------------
    w1v = w_ref[o_w1v:o_w1v + nfeat, 0:nhid]          # [nfeat, nhid]  bf16
    w1e = w_ref[o_w1e:o_w1e + efeat, 0:nhid]          # [efeat, nhid]  bf16
    w2v = w_ref[o_w2v:o_w2v + nhid, :]                # [nhid, c_pad]  bf16
    w2e = w_ref[o_w2e:o_w2e + nhid, :]                # [nhid, c_pad]  bf16
    b1v = b_ref[0:1, 0:nhid]                          # [1, nhid]      f32
    b1e = b_ref[1:2, 0:nhid]                          # [1, nhid]      f32
    b2 = b_ref[2:3, :]                                # [1, c_pad]     f32

    adj = adj_ref[...]                                # [N, N]         bf16

    # --- layer 1 (vertex): h_v = relu(adj @ (x @ W1v) + b1v) ---------------
    sup_v = jnp.dot(x_ref[...], w1v, preferred_element_type=f32)
    h_v = jnp.maximum(
        jnp.dot(adj, sup_v.astype(bf16), preferred_element_type=f32) + b1v, 0.0)

    # --- layer 1 (edge): h_e = relu(inc @ (y @ W1e) + b1e) -----------------
    sup_e = jnp.dot(y_ref[...], w1e, preferred_element_type=f32)
    h_e = jnp.maximum(
        jnp.dot(inc_ref[...], sup_e.astype(bf16), preferred_element_type=f32) + b1e, 0.0)

    # F.dropout(training=False) is identity; inference-only here.
    # TODO(synk): stochastic dropout (training=True) not implemented in-kernel.

    # --- layer 2: concat folded into split W2 -------------------------------
    #   concat([h_v, h_e]) @ W2 == h_v @ W2_v + h_e @ W2_e
    # (Re-stacking h into a single [N, 2*nhid] scratch for one K=2*nhid matmul
    #  would deepen MXU K-utilization on v6e/v7x but costs lane-offset stores;
    #  kept as two K=nhid matmuls here — negligible at these shapes.)
    z = (jnp.dot(h_v.astype(bf16), w2v, preferred_element_type=f32)
         + jnp.dot(h_e.astype(bf16), w2e, preferred_element_type=f32))
    logits = jnp.dot(adj, z.astype(bf16), preferred_element_type=f32) + b2

    # --- masked log_softmax over the first `nclass` lanes only --------------
    col = jax.lax.broadcasted_iota(jnp.int32, logits.shape, 1)
    valid = col < nclass
    masked = jnp.where(valid, logits, jnp.float32(-1e30))
    m = jnp.max(masked, axis=1, keepdims=True)
    p = jnp.exp(masked - m)            # dead lanes underflow to 0, never +inf
    lse = m + jnp.log(jnp.sum(p, axis=1, keepdims=True))

    out_ref[...] = logits - lse   # lane-dense full store; pad lanes sliced off in wrapper


def prepare_params(params, nhid, nclass):
    """One-time parameter prep (outside the hot path).

    Packs all matmul weights into one bf16 buffer (sections at bf16-sublane-
    aligned row offsets, columns padded to a 128-lane multiple; W2 split into
    its vertex / edge halves) and all biases into one f32 buffer.
    """
    f32 = jnp.float32
    w1_v = jnp.asarray(params["w1_v"], f32)
    w1_e = jnp.asarray(params["w1_e"], f32)
    w2 = jnp.asarray(params["w2"], f32)
    nfeat, efeat = w1_v.shape[0], w1_e.shape[0]
    c_pad = pl.cdiv(nclass, LANE) * LANE

    def rows_up(n):
        return pl.cdiv(n, SUB_BF16) * SUB_BF16

    r1, r2, r3 = rows_up(nfeat), rows_up(efeat), rows_up(nhid)
    w_offs = (0, r1, r1 + r2, r1 + r2 + r3)
    total_rows = r1 + r2 + 2 * r3

    w_pack = jnp.zeros((total_rows, c_pad), f32)
    w_pack = w_pack.at[w_offs[0]:w_offs[0] + nfeat, 0:nhid].set(w1_v)
    w_pack = w_pack.at[w_offs[1]:w_offs[1] + efeat, 0:nhid].set(w1_e)
    w_pack = w_pack.at[w_offs[2]:w_offs[2] + nhid, 0:nclass].set(w2[:nhid])
    w_pack = w_pack.at[w_offs[3]:w_offs[3] + nhid, 0:nclass].set(w2[nhid:])
    w_pack = w_pack.astype(jnp.bfloat16)

    b_pack = jnp.zeros((3, c_pad), f32)
    b_pack = b_pack.at[0, 0:nhid].set(jnp.asarray(params["b1_v"], f32))
    b_pack = b_pack.at[1, 0:nhid].set(jnp.asarray(params["b1_e"], f32))
    b_pack = b_pack.at[2, 0:nclass].set(jnp.asarray(params["b2"], f32))

    return {
        "w_pack": w_pack, "b_pack": b_pack, "w_offs": w_offs,
        "nclass": nclass, "nhid": nhid, "nfeat": nfeat, "efeat": efeat,
        "c_pad": c_pad,
    }


def line_gcn_forward(x, adj, y, inc, prepped, dropout=0.5, training=False):
    """Fused Line_GCN forward pass (inference)."""
    n = adj.shape[0]
    c_pad = prepped["c_pad"]
    bf16 = jnp.bfloat16

    # bf16 MXU inputs (halves HBM->VMEM bytes); accumulation stays f32 in-kernel.
    x_b, adj_b, y_b, inc_b = (jnp.asarray(a, bf16) for a in (x, adj, y, inc))
    operands = (x_b, adj_b, y_b, inc_b, prepped["w_pack"], prepped["b_pack"])

    def full(a):
        return pl.BlockSpec(a.shape, lambda i: (0,) * a.ndim)

    kernel = partial(_line_gcn_fused_kernel,
                     nclass=prepped["nclass"], nhid=prepped["nhid"],
                     nfeat=prepped["nfeat"], efeat=prepped["efeat"],
                     w_offs=prepped["w_offs"])

    out_padded = pl.pallas_call(
        kernel,
        out_shape=jax.ShapeDtypeStruct((n, c_pad), jnp.float32),
        grid=(1,),
        in_specs=[full(a) for a in operands],
        out_specs=pl.BlockSpec((n, c_pad), lambda i: (0, 0)),
        compiler_params=pltpu.CompilerParams(
            dimension_semantics=("arbitrary",)),
    )(*operands)

    # TODO(synk): for large N/E (or batches of graphs) this whole-array-in-VMEM
    # design must become a row-tiled grid: row axes of adj/out marked
    # "parallel" (fills both v7x TensorCores), contraction over N as a trailing
    # "arbitrary" axis with an f32 VMEM accumulator (pl.when init/finalize),
    # with tile sizes derived against the per-generation VMEM budget
    # (~64 MiB/TC on v7x vs 128 MiB on v5e/v6e) and >=512-wide lane tiles.
    return out_padded[:, :prepped["nclass"]]


def _reference_forward_f32(x, adj, y, inc, params):
    """Pure-JAX f32 reference (original, unsplit params)."""
    h_v = jax.nn.relu(adj @ (x @ params["w1_v"]) + params["b1_v"])
    h_e = jax.nn.relu(inc @ (y @ params["w1_e"]) + params["b1_e"])
    h = jnp.concatenate([h_v, h_e], axis=1)
    logits = adj @ (h @ params["w2"]) + params["b2"]
    return jax.nn.log_softmax(logits, axis=1)


def _reference_forward_bf16(x, adj, y, inc, params, nhid):
    """Quantization-matched reference: bf16 matmul inputs, f32 accumulation,
    mirroring exactly what the kernel computes."""
    bf16, f32 = jnp.bfloat16, jnp.float32

    def dot(a, b):
        return jnp.dot(a.astype(bf16), b.astype(bf16), preferred_element_type=f32)

    sup_v = dot(x, params["w1_v"])
    h_v = jax.nn.relu(dot(adj, sup_v) + params["b1_v"])
    sup_e = dot(y, params["w1_e"])
    h_e = jax.nn.relu(dot(inc, sup_e) + params["b1_e"])
    z = dot(h_v, params["w2"][:nhid]) + dot(h_e, params["w2"][nhid:])
    logits = dot(adj, z) + params["b2"]
    return jax.nn.log_softmax(logits, axis=1)


if __name__ == "__main__":
    # Small, module-consistent shapes.
    N, E = 64, 96           # nodes, edges
    nfeat, efeat = 32, 16
    nhid, nclass = 32, 8
    dropout = 0.5

    key = jax.random.PRNGKey(0)
    ks = jax.random.split(key, 10)

    x = jax.random.normal(ks[0], (N, nfeat), dtype=jnp.float32)
    y = jax.random.normal(ks[1], (E, efeat), dtype=jnp.float32)

    # Row-normalized dense adjacency and incidence matrices.
    adj_raw = (jax.random.uniform(ks[2], (N, N)) < 0.2).astype(jnp.float32)
    adj_raw = adj_raw + jnp.eye(N, dtype=jnp.float32)
    adj = adj_raw / jnp.sum(adj_raw, axis=1, keepdims=True)

    inc_raw = (jax.random.uniform(ks[3], (N, E)) < 0.1).astype(jnp.float32)
    inc = inc_raw / jnp.maximum(jnp.sum(inc_raw, axis=1, keepdims=True), 1.0)

    # Deterministic parameter init (GraphConvolution: weight [in, out], bias [out]).
    def uinit(k, shape):
        stdv = 1.0 / np.sqrt(shape[-1])
        return jax.random.uniform(k, shape, minval=-stdv, maxval=stdv,
                                  dtype=jnp.float32)

    params = {
        "w1_v": uinit(ks[4], (nfeat, nhid)),
        "b1_v": uinit(ks[5], (nhid,)),
        "w1_e": uinit(ks[6], (efeat, nhid)),
        "b1_e": uinit(ks[7], (nhid,)),
        "w2":   uinit(ks[8], (2 * nhid, nclass)),
        "b2":   uinit(ks[9], (nclass,)),
    }

    prepped = prepare_params(params, nhid, nclass)

    out = line_gcn_forward(x, adj, y, inc, prepped,
                           dropout=dropout, training=False)
    out = jax.block_until_ready(out)
    assert out.shape == (N, nclass)

    # Tight check vs. the quantization-matched (bf16-input) reference.
    ref_bf16 = jax.block_until_ready(
        _reference_forward_bf16(x, adj, y, inc, params, nhid))
    np.testing.assert_allclose(np.asarray(out), np.asarray(ref_bf16),
                               rtol=2e-3, atol=2e-3)

    # Loose sanity check vs. the pure f32 reference (bf16 quantization error).
    ref_f32 = jax.block_until_ready(_reference_forward_f32(x, adj, y, inc, params))
    np.testing.assert_allclose(np.asarray(out), np.asarray(ref_f32),
                               rtol=1e-1, atol=1e-1)

    print("KERNEL_OK")
</pallas_src>

<mosaic_0001>
module attributes {stable_mosaic.version = 11 : i64} {
  func.func @_line_gcn_fused_kernel(%arg0: i32, %arg1: memref<64x32xbf16, #tpu.memory_space<vmem>>, %arg2: memref<64x64xbf16, #tpu.memory_space<vmem>>, %arg3: memref<96x16xbf16, #tpu.memory_space<vmem>>, %arg4: memref<64x96xbf16, #tpu.memory_space<vmem>>, %arg5: memref<112x128xbf16, #tpu.memory_space<vmem>>, %arg6: memref<3x128xf32, #tpu.memory_space<vmem>>, %arg7: memref<64x128xf32, #tpu.memory_space<vmem>>) attributes {dimension_semantics = [#tpu.dimension_semantics<arbitrary>], iteration_bounds = array<i64: 1>, scalar_prefetch = 0 : i64, scratch_operands = 0 : i64, tpu.core_type = #tpu.core_type<tc>, window_params = [{pipeline_mode = #tpu.pipeline_mode<synchronous>, transform_indices = @transform_0, window_bounds = array<i64: 64, 32>}, {pipeline_mode = #tpu.pipeline_mode<synchronous>, transform_indices = @transform_1, window_bounds = array<i64: 64, 64>}, {pipeline_mode = #tpu.pipeline_mode<synchronous>, transform_indices = @transform_2, window_bounds = array<i64: 96, 16>}, {pipeline_mode = #tpu.pipeline_mode<synchronous>, transform_indices = @transform_3, window_bounds = array<i64: 64, 96>}, {pipeline_mode = #tpu.pipeline_mode<synchronous>, transform_indices = @transform_4, window_bounds = array<i64: 112, 128>}, {pipeline_mode = #tpu.pipeline_mode<synchronous>, transform_indices = @transform_5, window_bounds = array<i64: 3, 128>}, {pipeline_mode = #tpu.pipeline_mode<synchronous>, transform_indices = @transform_6, window_bounds = array<i64: 64, 128>}]} {
    %c0 = arith.constant 0 : index
    %c0_0 = arith.constant 0 : index
    %0 = vector.load %arg5[%c0, %c0_0] : memref<112x128xbf16, #tpu.memory_space<vmem>>, vector<32x32xbf16>
    %c32 = arith.constant 32 : index
    %c0_1 = arith.constant 0 : index
    %1 = vector.load %arg5[%c32, %c0_1] : memref<112x128xbf16, #tpu.memory_space<vmem>>, vector<16x32xbf16>
    %c48 = arith.constant 48 : index
    %c0_2 = arith.constant 0 : index
    %2 = vector.load %arg5[%c48, %c0_2] : memref<112x128xbf16, #tpu.memory_space<vmem>>, vector<32x128xbf16>
    %c80 = arith.constant 80 : index
    %c0_3 = arith.constant 0 : index
    %3 = vector.load %arg5[%c80, %c0_3] : memref<112x128xbf16, #tpu.memory_space<vmem>>, vector<32x128xbf16>
    %c0_4 = arith.constant 0 : index
    %c0_5 = arith.constant 0 : index
    %4 = vector.load %arg6[%c0_4, %c0_5] : memref<3x128xf32, #tpu.memory_space<vmem>>, vector<1x32xf32>
    %c1 = arith.constant 1 : index
    %c0_6 = arith.constant 0 : index
    %5 = vector.load %arg6[%c1, %c0_6] : memref<3x128xf32, #tpu.memory_space<vmem>>, vector<1x32xf32>
    %c2 = arith.constant 2 : index
    %c0_7 = arith.constant 0 : index
    %6 = vector.load %arg6[%c2, %c0_7] : memref<3x128xf32, #tpu.memory_space<vmem>>, vector<1x128xf32>
    %c0_8 = arith.constant 0 : index
    %c0_9 = arith.constant 0 : index
    %7 = vector.load %arg2[%c0_8, %c0_9] : memref<64x64xbf16, #tpu.memory_space<vmem>>, vector<64x64xbf16>
    %c0_10 = arith.constant 0 : index
    %c0_11 = arith.constant 0 : index
    %8 = vector.load %arg1[%c0_10, %c0_11] : memref<64x32xbf16, #tpu.memory_space<vmem>>, vector<64x32xbf16>
    %cst = arith.constant dense<0.000000e+00> : vector<64x32xf32>
    %9 = tpu.matmul %8, %0, %cst {dimension_numbers = #tpu.dot_dimension_numbers<[1], [0], [0], [1], [0, 0, 1, 1], [], []>} : vector<64x32xbf16>, vector<32x32xbf16>, vector<64x32xf32> -> vector<64x32xf32>
    %10 = arith.truncf %9 : vector<64x32xf32> to vector<64x32xbf16>
    %cst_12 = arith.constant dense<0.000000e+00> : vector<64x32xf32>
    %11 = tpu.matmul %7, %10, %cst_12 {dimension_numbers = #tpu.dot_dimension_numbers<[1], [0], [0], [1], [0, 0, 1, 1], [], []>} : vector<64x64xbf16>, vector<64x32xbf16>, vector<64x32xf32> -> vector<64x32xf32>
    %12 = vector.broadcast %4 : vector<1x32xf32> to vector<64x32xf32>
    %13 = arith.addf %11, %12 : vector<64x32xf32>
    %cst_13 = arith.constant 0.000000e+00 : f32
    %14 = vector.broadcast %cst_13 : f32 to vector<64x32xf32>
    %15 = arith.maximumf %13, %14 : vector<64x32xf32>
    %c0_14 = arith.constant 0 : index
    %c0_15 = arith.constant 0 : index
    %16 = vector.load %arg3[%c0_14, %c0_15] : memref<96x16xbf16, #tpu.memory_space<vmem>>, vector<96x16xbf16>
    %cst_16 = arith.constant dense<0.000000e+00> : vector<96x32xf32>
    %17 = tpu.matmul %16, %1, %cst_16 {dimension_numbers = #tpu.dot_dimension_numbers<[1], [0], [0], [1], [0, 0, 1, 1], [], []>} : vector<96x16xbf16>, vector<16x32xbf16>, vector<96x32xf32> -> vector<96x32xf32>
    %c0_17 = arith.constant 0 : index
    %c0_18 = arith.constant 0 : index
    %18 = vector.load %arg4[%c0_17, %c0_18] : memref<64x96xbf16, #tpu.memory_space<vmem>>, vector<64x96xbf16>
    %19 = arith.truncf %17 : vector<96x32xf32> to vector<96x32xbf16>
    %cst_19 = arith.constant dense<0.000000e+00> : vector<64x32xf32>
    %20 = tpu.matmul %18, %19, %cst_19 {dimension_numbers = #tpu.dot_dimension_numbers<[1], [0], [0], [1], [0, 0, 1, 1], [], []>} : vector<64x96xbf16>, vector<96x32xbf16>, vector<64x32xf32> -> vector<64x32xf32>
    %21 = vector.broadcast %5 : vector<1x32xf32> to vector<64x32xf32>
    %22 = arith.addf %20, %21 : vector<64x32xf32>
    %cst_20 = arith.constant 0.000000e+00 : f32
    %23 = vector.broadcast %cst_20 : f32 to vector<64x32xf32>
    %24 = arith.maximumf %22, %23 : vector<64x32xf32>
    %25 = arith.truncf %15 : vector<64x32xf32> to vector<64x32xbf16>
    %cst_21 = arith.constant dense<0.000000e+00> : vector<64x128xf32>
    %26 = tpu.matmul %25, %2, %cst_21 {dimension_numbers = #tpu.dot_dimension_numbers<[1], [0], [0], [1], [0, 0, 1, 1], [], []>} : vector<64x32xbf16>, vector<32x128xbf16>, vector<64x128xf32> -> vector<64x128xf32>
    %27 = arith.truncf %24 : vector<64x32xf32> to vector<64x32xbf16>
    %cst_22 = arith.constant dense<0.000000e+00> : vector<64x128xf32>
    %28 = tpu.matmul %27, %3, %cst_22 {dimension_numbers = #tpu.dot_dimension_numbers<[1], [0], [0], [1], [0, 0, 1, 1], [], []>} : vector<64x32xbf16>, vector<32x128xbf16>, vector<64x128xf32> -> vector<64x128xf32>
    %29 = arith.addf %26, %28 : vector<64x128xf32>
    %30 = arith.truncf %29 : vector<64x128xf32> to vector<64x128xbf16>
    %cst_23 = arith.constant dense<0.000000e+00> : vector<64x128xf32>
    %31 = tpu.matmul %7, %30, %cst_23 {dimension_numbers = #tpu.dot_dimension_numbers<[1], [0], [0], [1], [0, 0, 1, 1], [], []>} : vector<64x64xbf16>, vector<64x128xbf16>, vector<64x128xf32> -> vector<64x128xf32>
    %32 = vector.broadcast %6 : vector<1x128xf32> to vector<64x128xf32>
    %33 = arith.addf %31, %32 : vector<64x128xf32>
    %34 = tpu.iota {dimensions = array<i32: 1>} : vector<64x128xi32>
    %c8_i32 = arith.constant 8 : i32
    %35 = vector.broadcast %c8_i32 : i32 to vector<64x128xi32>
    %36 = arith.cmpi slt, %34, %35 : vector<64x128xi32>
    %cst_24 = arith.constant -1.000000e+30 : f32
    %37 = vector.broadcast %cst_24 : f32 to vector<64x128xf32>
    %38 = arith.select %36, %33, %37 : vector<64x128xi1>, vector<64x128xf32>
    %cst_25 = arith.constant dense<0xFF800000> : vector<64xf32>
    %39 = vector.multi_reduction <maximumf>, %38, %cst_25 [1] : vector<64x128xf32> to vector<64xf32>
    %40 = vector.shape_cast %39 : vector<64xf32> to vector<64x1xf32>
    %41 = vector.broadcast %40 : vector<64x1xf32> to vector<64x128xf32>
    %42 = arith.subf %38, %41 : vector<64x128xf32>
    %43 = math.exp %42 : vector<64x128xf32>
    %cst_26 = arith.constant dense<0.000000e+00> : vector<64xf32>
    %44 = vector.multi_reduction <add>, %43, %cst_26 [1] : vector<64x128xf32> to vector<64xf32>
    %45 = vector.shape_cast %44 : vector<64xf32> to vector<64x1xf32>
    %46 = math.log %45 : vector<64x1xf32>
    %47 = arith.addf %40, %46 : vector<64x1xf32>
    %48 = vector.broadcast %47 : vector<64x1xf32> to vector<64x128xf32>
    %49 = arith.subf %33, %48 : vector<64x128xf32>
    %c0_27 = arith.constant 0 : index
    %c0_28 = arith.constant 0 : index
    %50 = vector.load %arg7[%c0_27, %c0_28] : memref<64x128xf32, #tpu.memory_space<vmem>>, vector<64x128xf32>
    tpu.vector_store %arg7[%c0_27, %c0_28], %49 {strides = array<i32>} : memref<64x128xf32, #tpu.memory_space<vmem>>, vector<64x128xf32>,
    return
  }
  func.func @transform_0(%arg0: i32) -> (i32, i32) {
    %c0_i32 = arith.constant 0 : i32
    %c0_i32_0 = arith.constant 0 : i32
    %c0_i32_1 = arith.constant 0 : i32
    return %c0_i32, %c0_i32_0 : i32, i32
  }
  func.func @transform_1(%arg0: i32) -> (i32, i32) {
    %c0_i32 = arith.constant 0 : i32
    %c0_i32_0 = arith.constant 0 : i32
    %c0_i32_1 = arith.constant 0 : i32
    return %c0_i32, %c0_i32_0 : i32, i32
  }
  func.func @transform_2(%arg0: i32) -> (i32, i32) {
    %c0_i32 = arith.constant 0 : i32
    %c0_i32_0 = arith.constant 0 : i32
    %c0_i32_1 = arith.constant 0 : i32
    return %c0_i32, %c0_i32_0 : i32, i32
  }
  func.func @transform_3(%arg0: i32) -> (i32, i32) {
    %c0_i32 = arith.constant 0 : i32
    %c0_i32_0 = arith.constant 0 : i32
    %c0_i32_1 = arith.constant 0 : i32
    return %c0_i32, %c0_i32_0 : i32, i32
  }
  func.func @transform_4(%arg0: i32) -> (i32, i32) {
    %c0_i32 = arith.constant 0 : i32
    %c0_i32_0 = arith.constant 0 : i32
    %c0_i32_1 = arith.constant 0 : i32
    return %c0_i32, %c0_i32_0 : i32, i32
  }
  func.func @transform_5(%arg0: i32) -> (i32, i32) {
    %c0_i32 = arith.constant 0 : i32
    %c0_i32_0 = arith.constant 0 : i32
    %c0_i32_1 = arith.constant 0 : i32
    return %c0_i32, %c0_i32_0 : i32, i32
  }
  func.func @transform_6(%arg0: i32) -> (i32, i32) {
    %c0_i32 = arith.constant 0 : i32
    %c0_i32_0 = arith.constant 0 : i32
    %c0_i32_1 = arith.constant 0 : i32
    return %c0_i32, %c0_i32_0 : i32, i32
  }
}

</mosaic_0001>

<bundles_post_ra>
// kernel: tpu_custom_call.1
= control target key start
LH: loop header
LB: loop body
LE: loop exit
PB: predicated region body
PF: predicated region fallthrough
CT: control target
= control target key end

     0   :  { %11 = vsyncpa [#allocation3], 0  ;;  %s1147_s0 = inlined_call_operand.vmem [shape: bf16[64,32], index: 0, kind: input, shape index: {}]   ;;  %s1148_s1 = inlined_call_operand.vmem [shape: bf16[64,64], index: 1, kind: input, shape index: {}]   ;;  %s1149_s2 = inlined_call_operand.vmem [shape: bf16[96,16], index: 2, kind: input, shape index: {}]   ;;  %s1150_s3 = inlined_call_operand.hbm [shape: bf16[64,96], index: 3, kind: input, shape index: {}]   ;;  %s1151_s4 = inlined_call_operand.vmem [shape: bf16[112,128], index: 4, kind: input, shape index: {}]   ;;  %s1152_s5 = inlined_call_operand.vmem [shape: f32[3,128], index: 5, kind: input, shape index: {}]   ;;  %s1153_s6 = inlined_call_operand.hbm [shape: f32[64,128], index: 6, kind: output, shape index: {}]  }
   0x1   :  { %12 = vsyncpa [#allocation4], 0  ;;  %s23_s23 = sshll.u32 %s1150_s3, 4  ;;  %s942_s24 = smov [#allocation2]   ;;  %s24_s23 = int_to_ptr.hbm [resolvable:$true] %s23_s23 }
   0x2   :  { %s25_s25 = sshll.u32 %s942_s24, 4  ;;  %s943_s26 = smov 64   ;;  %s26_s25 = int_to_ptr.vmem [resolvable:$true] %s25_s25 }
   0x3   :  { %s944_s27 = smov 4  }
   0x4   :  { %31 = dma.hbm_to_vmem [thread:$0]  %s24_s23, 512, %s26_s25, [#allocation3], %s943_s26, %s943_s26, %s944_s27  }
   0x5   :  { %938 = dma.done.wait [#allocation3], 512  }
   0x6   :  { %939 = vsyncadd [#allocation3], 4294966784  ;;  %v820_v0 = vld [vmem:[%s1151_s4 + $0x10] sm:$0xff]  ;;  %v833_v1 = vld [vmem:[%s1149_s2] sm:$0xff]  ;;  %vm271_vm0 = vcmask 130048   ;;  %vm106_vm1 = vcmask 261120  }
   0x7   :  { %v819_v2 = vld [vmem:[%s1151_s4 + $0x8] sm:$0xff]  ;;  %297 = vmatpush.bf16.msra.mxu2 %v820_v0  ;;  %v818_v3 = vld [vmem:[%s1151_s4] sm:$0xff]  ;;  %v835_v7 = vld [vmem:[%s1149_s2 + $0x10] sm:$0xff]  ;;  %vm173_vm2 = vcmask 523264   ;;  %vm364_vm3 = vcmask 785408   ;;  %s675_s25 = sshll.u32 %s1153_s6, 4  ;;  %s676_s25 = int_to_ptr.hbm [resolvable:$true] %s675_s25 }
   0x8   :  { %125 = vmatpush.bf16.msra.mxu0 %v819_v2  ;;  %v829_v4 = vld [vmem:[%s1147_s0] sm:$0xff]  ;;  %v834_v5 = vld [vmem:[%s1149_s2 + $0x8] sm:$0xff]  ;;  %v831_v8 = vld [vmem:[%s1147_s0 + $0x10] sm:$0xff]  ;;  %s946_s26 = smov 128   ;;  %s947_s27 = smov 8  }
   0x9   :  { %v830_v6 = vld [vmem:[%s1147_s0 + $0x8] sm:$0xff]  ;;  %v836_v9 = vld [vmem:[%s1149_s2 + $0x18] sm:$0xff]  ;;  %v837_v11 = vld [vmem:[%s1149_s2 + $0x20] sm:$0xff] }
   0xa   :  { %764 = vmatmul.msk.bf16.vlgmr.msra.gmra.mxu2 %vm271_vm0, %v833_v1  ;;  %v832_v10 = vld [vmem:[%s1147_s0 + $0x18] sm:$0xff]  ;;  %v838_v12 = vld [vmem:[%s1149_s2 + $0x28] sm:$0xff]  ;;  %v1038_v36 = vld [vmem:[%s1148_s1] sm:$0xff] }
   0xb   :  { %v1045_v39 = vld [vmem:[%s1148_s1 + $0x8] sm:$0xff]  ;;  %v1052_v45 = vld [vmem:[%s1148_s1 + $0x10] sm:$0xff]  ;;  %v839_v46 = vld [vmem:[#allocation2] sm:$0xff] }
   0xc   :  { %126 = vmatpush.bf16.msra.mxu0 %v818_v3  ;;  %v840_v47 = vld [vmem:[#allocation2 + $0x8] sm:$0xff]  ;;  %v1059_v48 = vld [vmem:[%s1148_s1 + $0x18] sm:$0xff]  ;;  %v841_v49 = vld [vmem:[#allocation2 + $0x10] sm:$0xff] }
   0xd   :  { %v842_v50 = vld [vmem:[#allocation2 + $0x18] sm:$0xff]  ;;  %v855_v52 = vld [vmem:[%s1152_s5] ss:$0 sm:$0xff]  ;;  %v824_v62 = vld [vmem:[%s1151_s4 + $0x30] sm:$0xff] }
   0xe   :  { %v822_v54 = vld [vmem:[%s1151_s4 + $0x20] sm:$0xff]  ;;  %v821_v58 = vld [vmem:[%s1151_s4 + $0x18] sm:$0xff]  ;;  %v823_v2 = vld [vmem:[%s1151_s4 + $0x28] sm:$0xff] }
   0xf   :  { %712 = vmatmul.msk.bf16.vlgmr.msra.gmra.mxu0 %vm106_vm1, %v829_v4 }
  0x10   :  { %452 = vmatpush.bf16.msrb.mxu0 %v824_v62 }
  0x14   :  { %453 = vmatpush.bf16.msrb.mxu0 %v823_v2 }
  0x1a   :  { %765 = vmatmul.msk.bf16.gmra.mxu2 %vm271_vm0, %v834_v5 }
  0x1f   :  { %713 = vmatmul.msk.bf16.gmra.mxu0 %vm106_vm1, %v830_v6 }
  0x2a   :  { %766 = vmatmul.msk.bf16.gmra.mxu2 %vm271_vm0, %v835_v7 }
  0x2f   :  { %714 = vmatmul.msk.bf16.gmra.mxu0 %vm106_vm1, %v831_v8 }
  0x3a   :  { %767 = vmatmul.msk.bf16.gmra.mxu2 %vm271_vm0, %v836_v9 }
  0x3f   :  { %715 = vmatmul.msk.bf16.gmra.mxu0 %vm106_vm1, %v832_v10 }
  0x4a   :  { %768 = vmatmul.msk.bf16.gmra.mxu2 %vm271_vm0, %v837_v11 }
  0x5a   :  { %769 = vmatmul.msk.bf16.gmra.mxu2 %vm271_vm0, %v838_v12 }
  0x8c   :  { %v128_v13 = vpop.f32.mrf.mxu0 }
  0x8d   :  { %v299_v14 = vpop.f32.mrf.mxu2 }
  0x94   :  { %v130_v15 = vpop.f32.mrf.mxu0 }
  0x95   :  { %v301_v16 = vpop.f32.mrf.mxu2  ;;  %v148_v35 = vpack.c.bf16 %v130_v15, %v128_v13 }
  0x96   :  { %v337_v17 = vpack.c.bf16 %v301_v16, %v299_v14  ;;  %v856_v16 = vld [vmem:[%s1152_s5 + $0x1] ss:$0 sm:$0xff] }
  0x9c   :  { %v133_v18 = vpop.f32.mrf.mxu0 }
  0x9d   :  { %v304_v19 = vpop.f32.mrf.mxu2 }
  0xa4   :  { %v135_v20 = vpop.f32.mrf.mxu0 }
  0xa5   :  { %v306_v21 = vpop.f32.mrf.mxu2  ;;  %v149_v33 = vpack.c.bf16 %v135_v20, %v133_v18 }
  0xa6   :  { %v338_v22 = vpack.c.bf16 %v306_v21, %v304_v19 }
  0xac   :  { %v138_v23 = vpop.f32.mrf.mxu0 }
  0xad   :  { %v309_v24 = vpop.f32.mrf.mxu2 }
  0xb4   :  { %v140_v25 = vpop.f32.mrf.mxu0 }
  0xb5   :  { %v311_v26 = vpop.f32.mrf.mxu2  ;;  %v150_v32 = vpack.c.bf16 %v140_v25, %v138_v23 }
  0xb6   :  { %v339_v44 = vpack.c.bf16 %v311_v26, %v309_v24 }
  0xbc   :  { %v143_v27 = vpop.f32.mrf.mxu0 }
  0xbd   :  { %v314_v28 = vpop.f32.mrf.mxu2 }
  0xc4   :  { %v145_v29 = vpop.f32.mrf.mxu0 }
  0xc5   :  { %v316_v30 = vpop.f32.mrf.mxu2  ;;  %v151_v31 = vpack.c.bf16 %v145_v29, %v143_v27 }
  0xc6   :  { %v340_v43 = vpack.c.bf16 %v316_v30, %v314_v28 }
  0xc7   :  { %190 = vmatpush.bf16.msra.mxu1 %v151_v31 }
  0xcb   :  { %191 = vmatpush.bf16.msra.mxu1 %v150_v32 }
  0xcd   :  { %v319_v34 = vpop.f32.mrf.mxu2 }
  0xcf   :  { %192 = vmatpush.bf16.msra.mxu1 %v149_v33 }
  0xd3   :  { %193 = vmatpush.bf16.msra.mxu1 %v148_v35 }
  0xd5   :  { %v321_v37 = vpop.f32.mrf.mxu2 }
  0xd6   :  { %732 = vmatmul.msk.bf16.vlgmr.msra.gmra.mxu1 %vm173_vm2, %v1038_v36  ;;  %v341_v42 = vpack.c.bf16 %v321_v37, %v319_v34 }
  0xd7   :  { %505 = vmatpush.bf16.msrb.mxu1 %v822_v54 }
  0xdb   :  { %506 = vmatpush.bf16.msrb.mxu1 %v821_v58 }
  0xdd   :  { %v324_v38 = vpop.f32.mrf.mxu2 }
  0xe5   :  { %v326_v40 = vpop.f32.mrf.mxu2 }
  0xe6   :  { %v342_v41 = vpack.c.bf16 %v326_v40, %v324_v38  ;;  %733 = vmatmul.msk.bf16.gmra.mxu1 %vm173_vm2, %v1045_v39 }
  0xe8   :  { %379 = vmatpush.bf16.msrb.mxu2 %v342_v41  ;;  %843 = vmatpush.bf16.msra.mxu3 %v342_v41 }
  0xec   :  { %380 = vmatpush.bf16.msrb.mxu2 %v341_v42  ;;  %844 = vmatpush.bf16.msra.mxu3 %v341_v42 }
  0xf0   :  { %381 = vmatpush.bf16.msrb.mxu2 %v340_v43  ;;  %845 = vmatpush.bf16.msra.mxu3 %v340_v43 }
  0xf4   :  { %382 = vmatpush.bf16.msrb.mxu2 %v339_v44  ;;  %846 = vmatpush.bf16.msra.mxu3 %v339_v44 }
  0xf6   :  { %734 = vmatmul.msk.bf16.gmra.mxu1 %vm173_vm2, %v1052_v45 }
  0xf8   :  { %383 = vmatpush.bf16.msrb.mxu2 %v338_v22  ;;  %847 = vmatpush.bf16.msra.mxu3 %v338_v22 }
  0xfc   :  { %384 = vmatpush.bf16.msrb.mxu2 %v337_v17  ;;  %848 = vmatpush.bf16.msra.mxu3 %v337_v17 }
  0xff   :  { %786 = vmatmul.msk.bf16.vlgmr.msrb.gmra.mxu2 %vm364_vm3, %v839_v46  ;;  %787 = vmatmul.msk.bf16.vlgmr.msra.gmra.mxu3 %vm364_vm3, %v840_v47 }
 0x106   :  { %735 = vmatmul.msk.bf16.gmra.mxu1 %vm173_vm2, %v1059_v48 }
 0x10f   :  { %788 = vmatmul.msk.bf16.gmra.mxu3 %vm364_vm3, %v841_v49 }
 0x11f   :  { %789 = vmatmul.msk.bf16.gmra.mxu3 %vm364_vm3, %v842_v50 }
 0x153   :  { %v195_v51 = vpop.f32.mrf.mxu1 }
 0x154   :  { %v196_v53 = vadd.f32 %v855_v52, %v195_v51 }
 0x156   :  { %v215_v56 = vmax.f32 %v196_v53, 0.0 }
 0x15b   :  { %v197_v55 = vpop.f32.mrf.mxu1 }
 0x15c   :  { %v198_v57 = vadd.f32 %v855_v52, %v197_v55 }
 0x15e   :  { %v216_v59 = vmax.f32 %v198_v57, 0.0 }
 0x160   :  { %v414_v60 = vpack.c.bf16 %v216_v59, %v215_v56 }
 0x162   :  { %810 = vmatmul.msk.bf16.vlgmr.msrb.gmra.mxu1 %vm106_vm1, %v414_v60 }
 0x163   :  { %v200_v61 = vpop.f32.mrf.mxu1 }
 0x164   :  { %v201_v0 = vadd.f32 %v855_v52, %v200_v61 }
 0x166   :  { %v217_v3 = vmax.f32 %v201_v0, 0.0 }
 0x16b   :  { %v202_v63 = vpop.f32.mrf.mxu1 }
 0x16c   :  { %v203_v1 = vadd.f32 %v855_v52, %v202_v63 }
 0x16e   :  { %v218_v4 = vmax.f32 %v203_v1, 0.0 }
 0x170   :  { %v415_v5 = vpack.c.bf16 %v218_v4, %v217_v3 }
 0x172   :  { %811 = vmatmul.msk.bf16.gmra.mxu1 %vm106_vm1, %v415_v5 }
 0x173   :  { %v205_v6 = vpop.f32.mrf.mxu1 }
 0x174   :  { %v206_v8 = vadd.f32 %v855_v52, %v205_v6 }
 0x176   :  { %v219_v10 = vmax.f32 %v206_v8, 0.0 }
 0x17b   :  { %v207_v7 = vpop.f32.mrf.mxu1 }
 0x17c   :  { %v208_v9 = vadd.f32 %v855_v52, %v207_v7 }
 0x17e   :  { %v220_v11 = vmax.f32 %v208_v9, 0.0 }
 0x180   :  { %v416_v12 = vpack.c.bf16 %v220_v11, %v219_v10 }
 0x182   :  { %v386_v13 = vpop.f32.mrf.mxu2  ;;  %v391_v14 = vpop.f32.mrf.mxu3  ;;  %812 = vmatmul.msk.bf16.gmra.mxu1 %vm106_vm1, %v416_v12 }
 0x183   :  { %v210_v15 = vpop.f32.mrf.mxu1  ;;  %v387_v17 = vadd.f32 %v856_v16, %v386_v13  ;;  %v392_v31 = vadd.f32 %v856_v16, %v391_v14 }
 0x184   :  { %v211_v22 = vadd.f32 %v855_v52, %v210_v15 }
 0x185   :  { %v406_v24 = vmax.f32 %v387_v17, 0.0  ;;  %v408_v33 = vmax.f32 %v392_v31, 0.0  ;;  %v562_v17 = vlaneseq }
 0x186   :  { %v221_v26 = vmax.f32 %v211_v22, 0.0 }
 0x18a   :  { %v388_v18 = vpop.f32.mrf.mxu2  ;;  %v393_v21 = vpop.f32.mrf.mxu3 }
 0x18b   :  { %v389_v19 = vadd.f32 %v856_v16, %v388_v18  ;;  %v212_v20 = vpop.f32.mrf.mxu1  ;;  %v394_v32 = vadd.f32 %v856_v16, %v393_v21  ;;  %v563_v18 = vand.u32 127, %v562_v17 }
 0x18c   :  { %v213_v23 = vadd.f32 %v855_v52, %v212_v20 }
 0x18d   :  { %v407_v25 = vmax.f32 %v389_v19, 0.0  ;;  %v409_v34 = vmax.f32 %v394_v32, 0.0  ;;  %v857_v19 = vld [vmem:[%s1152_s5 + $0x2] ss:$0 sm:$0xff]  ;;  %vm564_vm4 = vcmp.lt.s32.totalorder %v563_v18, 8  ;;  %s945_s5 = smov [#allocation5]  }
 0x18e   :  { %v222_v27 = vmax.f32 %v213_v23, 0.0  ;;  %s673_s22 = sshll.u32 %s945_s5, 4  ;;  %s674_s22 = int_to_ptr.vmem [resolvable:$true] %s673_s22 }
 0x18f   :  { %v418_v28 = vpack.c.bf16 %v407_v25, %v406_v24  ;;  %v419_v35 = vpack.c.bf16 %v409_v34, %v408_v33 }
 0x190   :  { %v417_v29 = vpack.c.bf16 %v222_v27, %v221_v26 }
 0x191   :  { %798 = vmatmul.msk.bf16.vlgmr.msrb.gmra.mxu0 %vm106_vm1, %v418_v28 }
 0x192   :  { %813 = vmatmul.msk.bf16.gmra.mxu1 %vm106_vm1, %v417_v29  ;;  %v396_v30 = vpop.f32.mrf.mxu3 }
 0x193   :  { %v397_v38 = vadd.f32 %v856_v16, %v396_v30 }
 0x195   :  { %v410_v42 = vmax.f32 %v397_v38, 0.0 }
 0x19a   :  { %v398_v37 = vpop.f32.mrf.mxu3 }
 0x19b   :  { %v399_v40 = vadd.f32 %v856_v16, %v398_v37 }
 0x19d   :  { %v411_v43 = vmax.f32 %v399_v40, 0.0 }
 0x19f   :  { %v420_v44 = vpack.c.bf16 %v411_v43, %v410_v42 }
 0x1a1   :  { %799 = vmatmul.msk.bf16.gmra.mxu0 %vm106_vm1, %v419_v35 }
 0x1a2   :  { %v401_v41 = vpop.f32.mrf.mxu3 }
 0x1a3   :  { %v402_v47 = vadd.f32 %v856_v16, %v401_v41 }
 0x1a5   :  { %v412_v50 = vmax.f32 %v402_v47, 0.0 }
 0x1aa   :  { %v403_v46 = vpop.f32.mrf.mxu3 }
 0x1ab   :  { %v404_v49 = vadd.f32 %v856_v16, %v403_v46 }
 0x1ad   :  { %v413_v51 = vmax.f32 %v404_v49, 0.0 }
 0x1af   :  { %v421_v52 = vpack.c.bf16 %v413_v51, %v412_v50 }
 0x1b1   :  { %800 = vmatmul.msk.bf16.gmra.mxu0 %vm106_vm1, %v420_v44 }
 0x1c1   :  { %801 = vmatmul.msk.bf16.gmra.mxu0 %vm106_vm1, %v421_v52 }
 0x1df   :  { %v508_v53 = vpop.f32.mrf.mxu1 }
 0x1e7   :  { %v510_v54 = vpop.f32.mrf.mxu1 }
 0x1ef   :  { %v513_v57 = vpop.f32.mrf.mxu1 }
 0x1f7   :  { %v515_v60 = vpop.f32.mrf.mxu1 }
 0x1ff   :  { %v518_v62 = vpop.f32.mrf.mxu1 }
 0x207   :  { %v520_v0 = vpop.f32.mrf.mxu1 }
 0x20e   :  { %v455_v55 = vpop.f32.mrf.mxu0 }
 0x20f   :  { %v509_v56 = vadd.f32 %v508_v53, %v455_v55  ;;  %v523_v2 = vpop.f32.mrf.mxu1 }
 0x216   :  { %v457_v58 = vpop.f32.mrf.mxu0 }
 0x217   :  { %v525_v5 = vpop.f32.mrf.mxu1  ;;  %v511_v14 = vadd.f32 %v510_v54, %v457_v58 }
 0x219   :  { %v528_v16 = vpack.c.bf16 %v511_v14, %v509_v56 }
 0x21e   :  { %v460_v59 = vpop.f32.mrf.mxu0 }
 0x21f   :  { %v514_v13 = vadd.f32 %v513_v57, %v460_v59 }
 0x226   :  { %v462_v61 = vpop.f32.mrf.mxu0 }
 0x227   :  { %v516_v11 = vadd.f32 %v515_v60, %v462_v61 }
 0x229   :  { %v529_v15 = vpack.c.bf16 %v516_v11, %v514_v13 }
 0x22e   :  { %v465_v63 = vpop.f32.mrf.mxu0 }
 0x22f   :  { %v519_v10 = vadd.f32 %v518_v62, %v465_v63 }
 0x236   :  { %v467_v1 = vpop.f32.mrf.mxu0 }
 0x237   :  { %v521_v8 = vadd.f32 %v520_v0, %v467_v1 }
 0x239   :  { %v530_v12 = vpack.c.bf16 %v521_v8, %v519_v10 }
 0x23e   :  { %v470_v3 = vpop.f32.mrf.mxu0 }
 0x23f   :  { %v524_v6 = vadd.f32 %v523_v2, %v470_v3 }
 0x246   :  { %v472_v4 = vpop.f32.mrf.mxu0 }
 0x247   :  { %v526_v7 = vadd.f32 %v525_v5, %v472_v4 }
 0x249   :  { %v531_v9 = vpack.c.bf16 %v526_v7, %v524_v6 }
 0x24b   :  { %537 = vmatpush.bf16.msrb.mxu3 %v531_v9 }
 0x24f   :  { %538 = vmatpush.bf16.msrb.mxu3 %v530_v12 }
 0x253   :  { %539 = vmatpush.bf16.msrb.mxu3 %v529_v15 }
 0x257   :  { %540 = vmatpush.bf16.msrb.mxu3 %v528_v16 }
 0x25a   :  { %814 = vmatmul.msk.bf16.vlgmr.msrb.gmra.mxu3 %vm173_vm2, %v1038_v36 }
 0x26a   :  { %815 = vmatmul.msk.bf16.gmra.mxu3 %vm173_vm2, %v1045_v39 }
 0x27a   :  { %816 = vmatmul.msk.bf16.gmra.mxu3 %vm173_vm2, %v1052_v45 }
 0x28a   :  { %817 = vmatmul.msk.bf16.gmra.mxu3 %vm173_vm2, %v1059_v48 }
 0x2dd   :  { %v542_v20 = vpop.f32.mrf.mxu3 }
 0x2de   :  { %v1100_v21 = vadd.f32 %v857_v19, %v542_v20 }
 0x2e0   :  { %v565_v36 = vsel %vm564_vm4, %v1100_v21, -1e+30 }
 0x2e1   :  { %573 = vmax.xlane.f32.xlu0 %v565_v36 }
 0x2e5   :  { %v544_v39 = vpop.f32.mrf.mxu3 }
 0x2e6   :  { %v1104_v22 = vadd.f32 %v857_v19, %v544_v39 }
 0x2e8   :  { %v566_v45 = vsel %vm564_vm4, %v1104_v22, -1e+30 }
 0x2e9   :  { %575 = vmax.xlane.f32.xlu0 %v566_v45 }
 0x2ed   :  { %v547_v48 = vpop.f32.mrf.mxu3 }
 0x2ee   :  { %v1108_v23 = vadd.f32 %v857_v19, %v547_v48 }
 0x2f0   :  { %v567_v24 = vsel %vm564_vm4, %v1108_v23, -1e+30 }
 0x2f1   :  { %577 = vmax.xlane.f32.xlu1 %v567_v24 }
 0x2f5   :  { %v549_v25 = vpop.f32.mrf.mxu3 }
 0x2f6   :  { %v1112_v26 = vadd.f32 %v857_v19, %v549_v25 }
 0x2f8   :  { %v568_v27 = vsel %vm564_vm4, %v1112_v26, -1e+30 }
 0x2f9   :  { %579 = vmax.xlane.f32.xlu1 %v568_v27 }
 0x2fd   :  { %v552_v28 = vpop.f32.mrf.mxu3 }
 0x2fe   :  { %v1116_v29 = vadd.f32 %v857_v19, %v552_v28 }
 0x300   :  { %v569_v30 = vsel %vm564_vm4, %v1116_v29, -1e+30 }
 0x301   :  { %581 = vmax.xlane.f32.xlu2 %v569_v30 }
 0x305   :  { %v554_v31 = vpop.f32.mrf.mxu3 }
 0x306   :  { %v1120_v32 = vadd.f32 %v857_v19, %v554_v31 }
 0x308   :  { %v570_v33 = vsel %vm564_vm4, %v1120_v32, -1e+30 }
 0x309   :  { %583 = vmax.xlane.f32.xlu2 %v570_v33 }
 0x30d   :  { %v557_v34 = vpop.f32.mrf.mxu3 }
 0x30e   :  { %v1124_v35 = vadd.f32 %v857_v19, %v557_v34 }
 0x310   :  { %v571_v37 = vsel %vm564_vm4, %v1124_v35, -1e+30 }
 0x311   :  { %585 = vmax.xlane.f32.xlu0 %v571_v37 }
 0x315   :  { %v559_v38 = vpop.f32.mrf.mxu3 }
 0x316   :  { %v1128_v40 = vadd.f32 %v857_v19, %v559_v38 }
 0x318   :  { %v572_v41 = vsel %vm564_vm4, %v1128_v40, -1e+30 }
 0x319   :  { %587 = vmax.xlane.f32.xlu1 %v572_v41 }
 0x354   :  { %v574_v42 = vpop.xlane.xlu0 %573 }
 0x355   :  { %v589_v43 = vsub.f32 %v565_v36, %v574_v42 }
 0x357   :  { %v597_v44 = vmul.f32 1.442695, %v589_v43 }
 0x359   :  { %858 = vpow2.f32 %v597_v44 }
 0x35c   :  { %v576_v46 = vpop.xlane.xlu0 %575 }
 0x35d   :  { %v590_v47 = vsub.f32 %v566_v45, %v576_v46 }
 0x35f   :  { %v859_v49 = vpop.eup %858  ;;  %v599_v50 = vmul.f32 1.442695, %v590_v47 }
 0x360   :  { %613 = vadd.xlane.f32.xlu2 %v859_v49 }
 0x361   :  { %860 = vpow2.f32 %v599_v50 }
 0x364   :  { %v578_v51 = vpop.xlane.xlu1 %577 }
 0x365   :  { %v591_v52 = vsub.f32 %v567_v24, %v578_v51 }
 0x367   :  { %v861_v53 = vpop.eup %860  ;;  %v601_v54 = vmul.f32 1.442695, %v591_v52 }
 0x368   :  { %615 = vadd.xlane.f32.xlu0 %v861_v53 }
 0x369   :  { %862 = vpow2.f32 %v601_v54 }
 0x36c   :  { %v580_v55 = vpop.xlane.xlu1 %579 }
 0x36d   :  { %v592_v56 = vsub.f32 %v568_v27, %v580_v55 }
 0x36f   :  { %v863_v57 = vpop.eup %862  ;;  %v603_v58 = vmul.f32 1.442695, %v592_v56 }
 0x370   :  { %617 = vadd.xlane.f32.xlu1 %v863_v57 }
 0x371   :  { %864 = vpow2.f32 %v603_v58 }
 0x374   :  { %v582_v59 = vpop.xlane.xlu2 %581 }
 0x375   :  { %v593_v60 = vsub.f32 %v569_v30, %v582_v59 }
 0x377   :  { %v865_v61 = vpop.eup %864  ;;  %v605_v62 = vmul.f32 1.442695, %v593_v60 }
 0x378   :  { %619 = vadd.xlane.f32.xlu2 %v865_v61 }
 0x379   :  { %866 = vpow2.f32 %v605_v62 }
 0x37c   :  { %v584_v63 = vpop.xlane.xlu2 %583 }
 0x37d   :  { %v594_v0 = vsub.f32 %v570_v33, %v584_v63 }
 0x37f   :  { %v867_v1 = vpop.eup %866  ;;  %v607_v2 = vmul.f32 1.442695, %v594_v0 }
 0x380   :  { %621 = vadd.xlane.f32.xlu0 %v867_v1 }
 0x381   :  { %868 = vpow2.f32 %v607_v2 }
 0x384   :  { %v586_v3 = vpop.xlane.xlu0 %585 }
 0x385   :  { %v595_v4 = vsub.f32 %v571_v37, %v586_v3 }
 0x387   :  { %v869_v5 = vpop.eup %868  ;;  %v609_v6 = vmul.f32 1.442695, %v595_v4 }
 0x388   :  { %623 = vadd.xlane.f32.xlu1 %v869_v5 }
 0x389   :  { %870 = vpow2.f32 %v609_v6 }
 0x38c   :  { %v1132_v7 = vpop.xlane.xlu1 %587 }
 0x38d   :  { %v596_v8 = vsub.f32 %v572_v41, %v1132_v7 }
 0x38f   :  { %v871_v9 = vpop.eup %870  ;;  %v611_v10 = vmul.f32 1.442695, %v596_v8 }
 0x390   :  { %625 = vadd.xlane.f32.xlu2 %v871_v9 }
 0x391   :  { %872 = vpow2.f32 %v611_v10 }
 0x397   :  { %v873_v11 = vpop.eup %872 }
 0x398   :  { %627 = vadd.xlane.f32.xlu0 %v873_v11 }
 0x3d3   :  { %v614_v12 = vpop.xlane.xlu2 %613 }
 0x3d4   :  { %874 = vlog2.f32 %v614_v12 }
 0x3da   :  { %v875_v13 = vpop.eup %874 }
 0x3db   :  { %v630_v14 = vmul.f32 0.6931472, %v875_v13  ;;  %v616_v15 = vpop.xlane.xlu0 %615 }
 0x3dc   :  { %876 = vlog2.f32 %v616_v15 }
 0x3dd   :  { %v645_v16 = vadd.f32 %v630_v14, %v574_v42 }
 0x3df   :  { %v653_v17 = vsub.f32 %v1100_v21, %v645_v16 }
 0x3e1   :  { %661 = vst [vmem:[#allocation5] sm:$0xff] %v653_v17 }
 0x3e2   :  { %v877_v18 = vpop.eup %876 }
 0x3e3   :  { %v632_v19 = vmul.f32 0.6931472, %v877_v18  ;;  %v618_v20 = vpop.xlane.xlu1 %617 }
 0x3e4   :  { %878 = vlog2.f32 %v618_v20 }
 0x3e5   :  { %v646_v36 = vadd.f32 %v632_v19, %v576_v46 }
 0x3e7   :  { %v654_v39 = vsub.f32 %v1104_v22, %v646_v36 }
 0x3e9   :  { %662 = vst [vmem:[#allocation5 + $0x8] sm:$0xff] %v654_v39 }
 0x3ea   :  { %v879_v45 = vpop.eup %878 }
 0x3eb   :  { %v634_v48 = vmul.f32 0.6931472, %v879_v45  ;;  %v620_v24 = vpop.xlane.xlu2 %619 }
 0x3ec   :  { %880 = vlog2.f32 %v620_v24 }
 0x3ed   :  { %v647_v25 = vadd.f32 %v634_v48, %v578_v51 }
 0x3ef   :  { %v655_v27 = vsub.f32 %v1108_v23, %v647_v25 }
 0x3f1   :  { %663 = vst [vmem:[#allocation5 + $0x10] sm:$0xff] %v655_v27 }
 0x3f2   :  { %v881_v28 = vpop.eup %880 }
 0x3f3   :  { %v636_v30 = vmul.f32 0.6931472, %v881_v28  ;;  %v622_v21 = vpop.xlane.xlu0 %621 }
 0x3f4   :  { %882 = vlog2.f32 %v622_v21 }
 0x3f5   :  { %v648_v31 = vadd.f32 %v636_v30, %v580_v55 }
 0x3f7   :  { %v656_v33 = vsub.f32 %v1112_v26, %v648_v31 }
 0x3f9   :  { %664 = vst [vmem:[#allocation5 + $0x18] sm:$0xff] %v656_v33 }
 0x3fa   :  { %v883_v34 = vpop.eup %882 }
 0x3fb   :  { %v638_v37 = vmul.f32 0.6931472, %v883_v34  ;;  %v624_v22 = vpop.xlane.xlu1 %623 }
 0x3fc   :  { %884 = vlog2.f32 %v624_v22 }
 0x3fd   :  { %v649_v38 = vadd.f32 %v638_v37, %v582_v59 }
 0x3ff   :  { %v657_v41 = vsub.f32 %v1116_v29, %v649_v38 }
 0x401   :  { %665 = vst [vmem:[#allocation5 + $0x20] sm:$0xff] %v657_v41 }
 0x402   :  { %v885_v42 = vpop.eup %884 }
 0x403   :  { %v640_v43 = vmul.f32 0.6931472, %v885_v42  ;;  %v626_v23 = vpop.xlane.xlu2 %625 }
 0x404   :  { %886 = vlog2.f32 %v626_v23 }
 0x405   :  { %v650_v44 = vadd.f32 %v640_v43, %v584_v63 }
 0x407   :  { %v658_v46 = vsub.f32 %v1120_v32, %v650_v44 }
 0x409   :  { %666 = vst [vmem:[#allocation5 + $0x28] sm:$0xff] %v658_v46 }
 0x40a   :  { %v887_v47 = vpop.eup %886 }
 0x40b   :  { %v642_v49 = vmul.f32 0.6931472, %v887_v47  ;;  %v628_v26 = vpop.xlane.xlu0 %627 }
 0x40c   :  { %888 = vlog2.f32 %v628_v26 }
 0x40d   :  { %v651_v50 = vadd.f32 %v642_v49, %v586_v3 }
 0x40f   :  { %v659_v51 = vsub.f32 %v1124_v35, %v651_v50 }
 0x411   :  { %667 = vst [vmem:[#allocation5 + $0x30] sm:$0xff] %v659_v51 }
 0x412   :  { %v889_v52 = vpop.eup %888 }
 0x413   :  { %v644_v53 = vmul.f32 0.6931472, %v889_v52 }
 0x415   :  { %v652_v29 = vadd.f32 %v644_v53, %v1132_v7 }
 0x417   :  { %v660_v32 = vsub.f32 %v1128_v40, %v652_v29 }
 0x419   :  { %668 = vst [vmem:[#allocation5 + $0x38] sm:$0xff] %v660_v32 }
 0x41a   :  { %681 = dma.vmem_to_hbm [thread:$0]  %s674_s22, 1024, %s676_s25, [#allocation4], %s946_s26, %s946_s26, %s947_s27  }
 0x41b   :  { %940 = dma.done.wait [#allocation4], 1024  }
 0x41c   :  { %941 = vsyncadd [#allocation4], 4294966272 }
 0x41d   :  { %686 = vsyncpa [#allocation3], 1 }
 0x41e   :  { %687 = vsyncpa [#allocation4], 1 }

</bundles_post_ra>
